<compile_context>
chip_gen: v6e
topology: v6e:2x2x1
jax: 0.10.0
libtpu: 0.0.40
codegen_flags: <defaults>
</compile_context>

<pallas_src>
import jax
import jax.numpy as jnp
from jax.experimental import pallas as pl
from jax.experimental.pallas import tpu as pltpu

NEG_SLOPE = 0.01                    # PyTorch nn.LeakyReLU default
_LANE = 128
_BLOCK_BUDGET = 12 * 1024 * 1024    # bytes for double-buffered input+output blocks


def _down_kernel(a_ref, w_ref, b_ref, o_ref):
    # a_ref: (1, K, TP) patches, w_ref: (C_out, K), b_ref: (C_out, 1), o_ref: (1, C_out, TP)
    acc = jnp.dot(w_ref[...], a_ref[0], preferred_element_type=jnp.float32)
    acc = acc + b_ref[...]                                  # broadcast over lanes
    o_ref[0] = jnp.where(acc >= 0, acc, NEG_SLOPE * acc).astype(o_ref.dtype)


def _choose_tile(P, K, C_out, in_itemsize):
    """Largest 128-aligned spatial tile that fits the VMEM block budget."""
    per_lane = 2 * (K * in_itemsize + C_out * 4)            # dbl-buffered in + out, per lane
    tp_budget = max(_LANE, (_BLOCK_BUDGET // per_lane) // _LANE * _LANE)
    p_ceil = pl.cdiv(P, _LANE) * _LANE
    tp_budget = min(tp_budget, p_ceil)

    # Prefer an exact 128-multiple divisor of P (no padding) if it is not much
    # smaller than the budget; otherwise take the budget tile and pad P.
    best_div = 0
    if P % _LANE == 0:
        t = tp_budget
        while t >= _LANE:
            if P % t == 0:
                best_div = t
                break
            t -= _LANE
    return best_div if best_div >= tp_budget // 2 else tp_budget


def down_forward(x, weight, bias, scale, *, use_bf16=False):
    """x: (N, C_in, H, W) f32; weight: (C_out, C_in, scale, scale); bias: (C_out,)."""
    N, C_in, H, W = x.shape
    C_out = weight.shape[0]
    Ho, Wo = H // scale, W // scale
    K = C_in * scale * scale
    P = Ho * Wo

    # PyTorch's conv silently floors non-divisible spatial dims; crop to match.
    x = x[:, :, :Ho * scale, :Wo * scale]

    # Patchify to (N, K, P); K ordered (C_in, dy, dx) to match weight.reshape below.
    # Output (N, C_out, P) then reshapes directly to NCHW (no post-transpose pass).
    a = x.reshape(N, C_in, Ho, scale, Wo, scale)
    a = jnp.transpose(a, (0, 1, 3, 5, 2, 4)).reshape(N, K, P)

    w_mat = weight.reshape(C_out, K)
    b_mat = bias.reshape(C_out, 1).astype(jnp.float32)

    in_dtype = jnp.bfloat16 if use_bf16 else x.dtype
    a = a.astype(in_dtype)
    w_mat = w_mat.astype(in_dtype)
    itemsize = jnp.dtype(in_dtype).itemsize

    TP = _choose_tile(P, K, C_out, itemsize)

    # v7x dual-TensorCore: make sure there are >=2 independent tiles when N == 1.
    if N * pl.cdiv(P, TP) < 2 and TP > _LANE:
        TP = max(_LANE, (TP // 2) // _LANE * _LANE)

    n_tiles = pl.cdiv(P, TP)
    P_pad = n_tiles * TP
    if P_pad != P:
        a = jnp.pad(a, ((0, 0), (0, 0), (0, P_pad - P)))    # lane-dense, unmasked stores

    grid = (N, n_tiles)

    vmem_need = (2 * (K * TP * itemsize + C_out * TP * 4)
                 + C_out * K * itemsize + C_out * 4)
    vmem_limit = int(min(56 * 2**20,
                         max(32 * 2**20, int(vmem_need * 1.5) + (2 << 20))))

    cost = pl.CostEstimate(
        flops=2 * N * P_pad * K * C_out,
        transcendentals=0,
        bytes_accessed=(N * K * P_pad * itemsize + C_out * K * itemsize
                        + C_out * 4 + N * C_out * P_pad * 4),
    )

    out = pl.pallas_call(
        _down_kernel,
        out_shape=jax.ShapeDtypeStruct((N, C_out, P_pad), x.dtype),
        grid_spec=pltpu.PrefetchScalarGridSpec(
            num_scalar_prefetch=0,
            grid=grid,
            in_specs=[
                pl.BlockSpec((1, K, TP), lambda n, j: (n, 0, j)),
                pl.BlockSpec((C_out, K), lambda n, j: (0, 0)),   # resident weights
                pl.BlockSpec((C_out, 1), lambda n, j: (0, 0)),   # resident bias
            ],
            out_specs=pl.BlockSpec((1, C_out, TP), lambda n, j: (n, 0, j)),
        ),
        compiler_params=pltpu.CompilerParams(
            dimension_semantics=("parallel", "parallel"),
            vmem_limit_bytes=vmem_limit,
        ),
        cost_estimate=cost,
    )(a, w_mat, b_mat)

    if P_pad != P:
        out = out[:, :, :P]
    # (N, C_out, Ho*Wo) -> (N, C_out, Ho, Wo): pure reshape, already NCHW.
    return out.reshape(N, C_out, Ho, Wo)


def down_reference(x, weight, bias, scale):
    """Pure-JAX reference (lax conv) for correctness checking."""
    y = jax.lax.conv_general_dilated(
        x, weight,
        window_strides=(scale, scale),
        padding="VALID",
        dimension_numbers=("NCHW", "OIHW", "NCHW"),
    )
    y = y + bias.reshape(1, -1, 1, 1)
    return jnp.where(y >= 0, y, NEG_SLOPE * y)


if __name__ == "__main__":
    key = jax.random.PRNGKey(0)
    k_x, k_w, k_b = jax.random.split(key, 3)

    # Down(in_channels=4, out_channels=8, scale=2), input (2, 4, 16, 16)
    N, C_in, H, W = 2, 4, 16, 16
    C_out, scale = 8, 2

    x = jax.random.normal(k_x, (N, C_in, H, W), dtype=jnp.float32)
    fan_in = C_in * scale * scale
    bound = 1.0 / (fan_in ** 0.5)
    weight = jax.random.uniform(k_w, (C_out, C_in, scale, scale),
                                minval=-bound, maxval=bound, dtype=jnp.float32)
    bias = jax.random.uniform(k_b, (C_out,), minval=-bound, maxval=bound,
                              dtype=jnp.float32)

    y_ref = down_reference(x, weight, bias, scale)

    # f32 path: exact parity with the PyTorch module.
    y = down_forward(x, weight, bias, scale)
    jax.block_until_ready(y)
    assert y.shape == (N, C_out, H // scale, W // scale)
    assert jnp.allclose(y, y_ref, atol=1e-5, rtol=1e-5)

    # Optional bf16 input-stream path (perf mode): relaxed tolerance.
    y16 = down_forward(x, weight, bias, scale, use_bf16=True)
    jax.block_until_ready(y16)
    assert jnp.allclose(y16, y_ref, atol=5e-2, rtol=5e-2)

    print("KERNEL_OK")
</pallas_src>

<mosaic_0001>
module attributes {stable_mosaic.version = 11 : i64} {
  func.func @_down_kernel(%arg0: i32, %arg1: i32, %arg2: memref<1x16x128xf32, #tpu.memory_space<vmem>>, %arg3: memref<8x16xf32, #tpu.memory_space<vmem>>, %arg4: memref<8x1xf32, #tpu.memory_space<vmem>>, %arg5: memref<1x8x128xf32, #tpu.memory_space<vmem>>) attributes {dimension_semantics = [#tpu.dimension_semantics<parallel>, #tpu.dimension_semantics<parallel>], iteration_bounds = array<i64: 2, 1>, scalar_prefetch = 0 : i64, scratch_operands = 0 : i64, tpu.core_type = #tpu.core_type<tc>, window_params = [{transform_indices = @transform_0, window_bounds = array<i64: 1, 16, 128>}, {pipeline_mode = #tpu.pipeline_mode<synchronous>, transform_indices = @transform_1, window_bounds = array<i64: 8, 16>}, {pipeline_mode = #tpu.pipeline_mode<synchronous>, transform_indices = @transform_2, window_bounds = array<i64: 8, 1>}, {transform_indices = @transform_3, window_bounds = array<i64: 1, 8, 128>}]} {
    %c0 = arith.constant 0 : index
    %c0_0 = arith.constant 0 : index
    %0 = vector.load %arg3[%c0, %c0_0] : memref<8x16xf32, #tpu.memory_space<vmem>>, vector<8x16xf32>
    %c0_1 = arith.constant 0 : index
    %c0_2 = arith.constant 0 : index
    %c0_3 = arith.constant 0 : index
    %1 = vector.load %arg2[%c0_1, %c0_2, %c0_3] : memref<1x16x128xf32, #tpu.memory_space<vmem>>, vector<1x16x128xf32>
    %2 = vector.shape_cast %1 : vector<1x16x128xf32> to vector<16x128xf32>
    %cst = arith.constant dense<0.000000e+00> : vector<8x128xf32>
    %3 = tpu.matmul %0, %2, %cst {dimension_numbers = #tpu.dot_dimension_numbers<[1], [0], [0], [1], [0, 0, 1, 1], [], []>} : vector<8x16xf32>, vector<16x128xf32>, vector<8x128xf32> -> vector<8x128xf32>
    %c0_4 = arith.constant 0 : index
    %c0_5 = arith.constant 0 : index
    %4 = vector.load %arg4[%c0_4, %c0_5] : memref<8x1xf32, #tpu.memory_space<vmem>>, vector<8x1xf32>
    %5 = vector.broadcast %4 : vector<8x1xf32> to vector<8x128xf32>
    %6 = arith.addf %3, %5 : vector<8x128xf32>
    %cst_6 = arith.constant 0.000000e+00 : f32
    %7 = vector.broadcast %cst_6 : f32 to vector<8x128xf32>
    %8 = arith.cmpf oge, %6, %7 : vector<8x128xf32>
    %cst_7 = arith.constant 0.00999999977 : f32
    %9 = vector.broadcast %cst_7 : f32 to vector<8x128xf32>
    %10 = arith.mulf %9, %6 : vector<8x128xf32>
    %11 = arith.select %8, %6, %10 : vector<8x128xi1>, vector<8x128xf32>
    %c0_8 = arith.constant 0 : index
    %c0_9 = arith.constant 0 : index
    %c0_10 = arith.constant 0 : index
    %12 = vector.load %arg5[%c0_8, %c0_9, %c0_10] : memref<1x8x128xf32, #tpu.memory_space<vmem>>, vector<1x8x128xf32>
    %13 = vector.shape_cast %12 : vector<1x8x128xf32> to vector<8x128xf32>
    %14 = vector.shape_cast %11 : vector<8x128xf32> to vector<1x8x128xf32>
    tpu.vector_store %arg5[%c0_8, %c0_9, %c0_10], %14 {strides = array<i32>} : memref<1x8x128xf32, #tpu.memory_space<vmem>>, vector<1x8x128xf32>,
    return
  }
  func.func @transform_0(%arg0: i32, %arg1: i32) -> (i32, i32, i32) {
    %c0_i32 = arith.constant 0 : i32
    %c0_i32_0 = arith.constant 0 : i32
    return %arg0, %c0_i32, %arg1 : i32, i32, i32
  }
  func.func @transform_1(%arg0: i32, %arg1: i32) -> (i32, i32) {
    %c0_i32 = arith.constant 0 : i32
    %c0_i32_0 = arith.constant 0 : i32
    %c0_i32_1 = arith.constant 0 : i32
    return %c0_i32, %c0_i32_0 : i32, i32
  }
  func.func @transform_2(%arg0: i32, %arg1: i32) -> (i32, i32) {
    %c0_i32 = arith.constant 0 : i32
    %c0_i32_0 = arith.constant 0 : i32
    %c0_i32_1 = arith.constant 0 : i32
    return %c0_i32, %c0_i32_0 : i32, i32
  }
  func.func @transform_3(%arg0: i32, %arg1: i32) -> (i32, i32, i32) {
    %c0_i32 = arith.constant 0 : i32
    %c0_i32_0 = arith.constant 0 : i32
    return %arg0, %c0_i32, %arg1 : i32, i32, i32
  }
}

</mosaic_0001>

<bundles_post_ra>
// kernel: tpu_custom_call.1
= control target key start
LH: loop header
LB: loop body
LE: loop exit
PB: predicated region body
PF: predicated region fallthrough
CT: control target
= control target key end

     0   :  { %8 = vsyncpa [#allocation3], 0  ;;  %s765_s0 = inlined_call_operand.hbm [shape: f32[2,16,128], index: 0, kind: input, shape index: {}]   ;;  %s766_s1 = inlined_call_operand.vmem [shape: f32[8,16], index: 1, kind: input, shape index: {}]   ;;  %s767_s2 = inlined_call_operand.vmem [shape: f32[8,1], index: 2, kind: input, shape index: {}]   ;;  %s768_s3 = inlined_call_operand.hbm [shape: f32[2,8,128], index: 3, kind: output, shape index: {}]  }
   0x1   :  { %10 = vsyncpa [#allocation3 + $0x1], 0 }
   0x2   :  { %11 = vsyncpa [#allocation4], 0 }
   0x3   :  { %13 = vsyncpa [#allocation4 + $0x1], 0  ;;  %s620_s12 = smov 0   ;;  %s622_s13 = smov 0  }
   0x4   :  { %s624_s14 = smov 0   ;;  %s626_s15 = smov 0  }
   0x5   :  { %s628_s16 = smov 0   ;;  %s630_s17 = smov 0  }
   0x6 LB: > { %s389_s18 = sadd.s32 4294967295, %s591_s17   ;;  %s390_s19 = sadd.s32 4294967294, %s591_s17   ;;  %s591_s17 = sphi %s630_s17, %s19_s17   ;;  %s587_s16 = sphi %s628_s16, %s779_s16   ;;  %s583_s15 = sphi %s626_s15, %s778_s15   ;;  %s579_s14 = sphi %s624_s14, %s777_s14   ;;  %s575_s13 = sphi %s622_s13, %s776_s13   ;;  %s571_s12 = sphi %s620_s12, %s775_s12  }
   0x7   : > { %s31_s20 = sadd.s32 1, %s587_s16  ;;  %s40_s21 = sadd.s32 1, %s579_s14 }
   0x8   : > { %p33_p0 = scmp.ge.s32.totalorder %s31_s20, 2  ;;  %p47_p1 = scmp.ne.s32.totalorder %s579_s14, %s575_s13 }
   0x9   : > { %p48_p2 = scmp.eq.s32.totalorder %s591_s17, 0  ;;  %p53_p3 = scmp.ne.s32.totalorder %s575_s13, %s571_s12 }
   0xa   : > { %s781_s20 = smov (%p33_p0, %s31_s20), 0  ;;  %p54_p5 = scmp.eq.s32.totalorder %s389_s18, 0 }
   0xb   : > { %p661_p4 = por %p48_p2, %p47_p1  ;;  %s35_s23 = ssub.s32 %s587_s16, %s781_s20 }
   0xc   : > { %p121_p6 = scmp.eq.s32.totalorder %s389_s18, 1  ;;  %p38_p7 = scmp.eq.s32.totalorder %s35_s23, 0 }
   0xd   : > { %p667_p8 = por %p54_p5, %p53_p3  ;;  %p127_p10 = scmp.eq.s32.totalorder %s390_s19, 1 }
   0xe   : > { %p671_p9 = por %p121_p6, %p47_p1  ;;  %p427_p13 = scmp.lt.s32.totalorder %s591_s17, 2 }
   0xf   : > { %s676_s26 = scalar_select %p38_p7, %s579_s14, %s40_s21  }
  0x10   : > { %p678_p11 = por %p127_p10, %p53_p3  ;;  %s153_s28 = sand.u32 1, %s579_s14  }
  0x11   : > { %s393_s29 = sshll.u32 %s153_s28, 4  ;;  %s404_s30 = sshll.u32 %s587_s16, 8 }
  0x12   : > { %s164_s6 = scalar_lea.hbm %s765_s0, %s404_s30  ;;  %s157_s7 = scalar_lea.vmem [#allocation2], %s393_s29 }
  0x13   : > { %s165_s8 = sshll.u32 %s157_s7, 4  ;;  %p691_p0 = pnand %p427_p13, %p661_p4  ;;  %s166_s8 = int_to_ptr.vmem [resolvable:$true] %s165_s8 }
  0x14   : > { %p396_p1 = scmp.ge.s32.totalorder %s591_s17, 1  ;;  %s154_s10 = scalar_lea.sflag [#allocation3], %s153_s28 }
  0x15   : > { %p485_p2 = pneg %p691_p0  ;;  %s496_s11 = scalar_lea.vmem %s166_s8, 256 }
  0x16   : > { %p497_p3 = scmp.ne.s32.totalorder %s166_s8, %s496_s11  ;;  %s593_s18 = smov [#allocation2]  }
  0x17   : > { %s501_s19 = sshll.u32 %s593_s18, 4  ;;  %s502_s19 = int_to_ptr.vmem [resolvable:$false] %s501_s19 }
  0x18   : > { %p499_p5 = pnand %p497_p3, %p485_p2  ;;  %s503_s21 = scalar_lea.vmem %s502_s19, 512 }
  0x19   : > { %p504_p7 = scmp.lt.s32.totalorder %s166_s8, %s502_s19  ;;  %p505_p10 = scmp.lt.s32.totalorder %s503_s21, %s496_s11 }
  0x1a   : > { %p500_p6 = pneg %p499_p5 }
  0x1b   : > { %p506_p12 = por %p505_p10, %p504_p7 }
  0x1d   : > { %p507_p4 = pnand %p506_p12, %p500_p6 }
  0x1f   : > { %510 = shalt.err (!%p507_p4)
}
  0x20   : > { %s594_s22 = smov 128   ;;  %s595_s23 = smov 8  }
  0x21   : > { %422 = dma.hbm_to_vmem [thread:$0]  (!%p691_p0), %s164_s6, 256, %s166_s8, %s154_s10, %s594_s22, %s594_s22, %s595_s23  }
  0x22   : > { %p173_p13 = scmp.lt.s32.totalorder %s591_s17, 3 }
  0x24   : > { %p174_p2 = pnand %p396_p1, %p173_p13 }
  0x25   : > { %s704_s28 = sand.u32 (!%p174_p2), 1, %s575_s13  }
  0x26   : > { %177 = sbr.rel (%p174_p2) target bundleno = 260 (0x104), region = 32  ;;  %s397_s29 = sshll.u32 (!%p174_p2), %s704_s28, 4 }
  0x27   : > { %s180_s30 = scalar_lea.sflag (!%p174_p2), [#allocation3], %s704_s28  ;;  %s183_s4 = scalar_lea.vmem (!%p174_p2), [#allocation2], %s397_s29 }
  0x2b   : > { %562 = dma.done.wait (%p667_p8), %s180_s30, 256  }
  0x2c   : > { %564 = vsyncadd (%p667_p8), %s180_s30, 4294967040  ;;  %v596_v0 = vmov 0.0   ;;  %vm597_vm0 = vmmov 0   ;;  %v598_v1 = vmov 0   ;;  %v208_v2 = vld [vmem:[%s183_s4 + $0x8] sm:$0xff]  ;;  %v207_v3 = vld [vmem:[%s183_s4] sm:$0xff] }
  0x2d   : > { %408 = vmatprep.subr.mxu0 %v596_v0  ;;  %412 = vmatprep.mubr.msk.f32.mxu0 %vm597_vm0, %v596_v0  ;;  %v206_v4 = vld [vmem:[%s766_s1] sm:$0xff]  ;;  %vm215_vm1 = vcmask 130048   ;;  %s398_s24 = sshll.u32 %s704_s28, 3  ;;  %s401_s9 = sshll.u32 %s583_s15, 7 }
  0x2e   : > { %482 = vset.pattern.permute.xlu0 %v598_v1  ;;  %409 = vmatpush3.msra.mxu0 %v208_v2  ;;  %v209_v5 = vld [vmem:[%s767_s2] sm:$0xff]  ;;  %s205_s10 = scalar_lea.vmem [#allocation5], %s398_s24  ;;  %s723_s21 = scalar_lea.hbm %s768_s3, %s401_s9 }
  0x2f   : > { %410 = vmatprep.subr.mxu0 %v596_v0  ;;  %212 = vperm.xlu0 %482, %v209_v5   ;;  %s308_s11 = sshll.u32 %s205_s10, 4  ;;  %s294_s22 = scalar_lea.sflag [#allocation4], %s704_s28  ;;  %s309_s11 = int_to_ptr.vmem [resolvable:$true] %s308_s11 }
  0x30   : > { %411 = vmatpush3.msra.mxu0 %v207_v3  ;;  %s511_s23 = scalar_lea.vmem %s309_s11, 128  ;;  %s599_s15 = smov [#allocation5]  }
  0x31   : > { %413 = vmatmul.mubr.msk.f32.vlgmr.msra.gmra.mxu0 %vm215_vm1, %v206_v4  ;;  %p512_p8 = scmp.ne.s32.totalorder %s309_s11, %s511_s23  ;;  %s515_s29 = sshll.u32 %s599_s15, 4  ;;  %s516_s29 = int_to_ptr.vmem [resolvable:$false] %s515_s29 }
  0x32   : > { %s517_s30 = scalar_lea.vmem %s516_s29, 256  ;;  %p518_p1 = scmp.lt.s32.totalorder %s309_s11, %s516_s29 }
  0x33   : > { %p513_p12 = pnand %p512_p8, %p671_p9  ;;  %p519_p3 = scmp.lt.s32.totalorder %s517_s30, %s511_s23 }
  0x35   : > { %p514_p0 = pneg %p513_p12  ;;  %p520_p5 = por %p519_p3, %p518_p1 }
  0x37   : > { %p521_p6 = pnand %p520_p5, %p514_p0 }
  0xaa   : > { %v213_v6 = vpop.permute.xlu0 %212 }
  0xf1   : > { %v285_v7 = vpop.f32.mrf.mxu0 }
  0xf2   : > { %v286_v8 = vadd.f32 %v285_v7, %v213_v6 }
  0xf3   : > { %v414_v9 = vpop.f32.mrf.mxu0 }
  0xf4   : > { %vm289_vm2 = vcmp.ge.f32.partialorder %v286_v8, 0.0  ;;  %v290_v10 = vmul.f32 0.01, %v286_v8 }
  0xf6   : > { %v291_v11 = vsel %vm289_vm2, %v286_v8, %v290_v10 }
  0xf7   : > { %292 = vst [vmem:[%s205_s10] sm:$0xff] %v291_v11 }
  0xf8   : > { %524 = shalt.err (!%p521_p6)
}
  0xf9   : > { %s525_s4 = scalar_lea.hbm %s723_s21, 128  ;;  %s529_s6 = scalar_lea.hbm %s768_s3, 256 }
  0xfa   : > { %p526_p7 = scmp.ne.s32.totalorder %s723_s21, %s525_s4  ;;  %p530_p13 = scmp.lt.s32.totalorder %s723_s21, %s768_s3 }
  0xfb   : > { %p531_p2 = scmp.lt.s32.totalorder %s529_s6, %s525_s4 }
  0xfc   : > { %p527_p10 = pnand %p526_p7, %p671_p9 }
  0xfd   : > { %p532_p8 = por %p531_p2, %p530_p13 }
  0xfe   : > { %p528_p4 = pneg %p527_p10 }
 0x100   : > { %p533_p12 = pnand %p532_p8, %p528_p4 }
 0x102   : > { %536 = shalt.err (!%p533_p12)
}
 0x103   : > { %417 = dma.vmem_to_hbm [thread:$0]  (%p671_p9), %s309_s11, 128, %s723_s21, %s294_s22  }
 0x104 PF: > { %s320_s24 = sand.u32 1, %s571_s12   ;;  %p774_p0 = scmp.ge.s32.totalorder %s591_s17, 2 }
 0x105   : > { %s321_s9 = scalar_lea.sflag [#allocation4], %s320_s24 }
 0x106   : > { %p424_p1 = pnand %p774_p0, %p678_p11 }
 0x108   : > { %p425_p3 = pneg %p424_p1 }
 0x10a   : > { %566 = dma.done.wait (%p425_p3), %s321_s9, 128  }
 0x10b   : > { %568 = vsyncadd (%p425_p3), %s321_s9, 4294967168  ;;  %s19_s17 = sadd.s32 1, %s591_s17   ;;  %s775_s12 = smov %s575_s13 }
 0x10c   : > { %p16_p5 = scmp.ge.s32.totalorder %s19_s17, 4   ;;  %s776_s13 = smov %s579_s14 }
 0x10d   : > { %s777_s14 = smov %s676_s26  ;;  %s778_s15 = smov %s587_s16 }
 0x10e   : > { %s779_s16 = smov %s781_s20  ;;  %18 = sbr.rel (!%p16_p5) target bundleno = 6 (0x6), region = 77 }
 0x113   :  { %326 = vsyncpa [#allocation3], 1 }
 0x114   :  { %328 = vsyncpa [#allocation3 + $0x1], 1 }
 0x115   :  { %329 = vsyncpa [#allocation4], 1 }
 0x116   :  { %331 = vsyncpa [#allocation4 + $0x1], 1 }

</bundles_post_ra>
